<compile_context>
chip_gen: v5e
topology: v5e:2x2
jax: 0.10.0
libtpu: 0.0.40
codegen_flags: <defaults>
</compile_context>

<pallas_src>
import functools

import jax
import jax.numpy as jnp
from jax import lax
from jax.experimental import pallas as pl
from jax.experimental.pallas import tpu as pltpu

NUM_ITERS = 16        # fixed Lloyd iterations (sklearn max_iter=300; converges far sooner here)
MAX_TILE_N = 4096     # streaming-regime cap on rows per tile (multiple of 128)
_PAD_DIST = 1e30      # effective +inf distance for padded (non-existent) clusters


def _round_up(a, b):
    return (a + b - 1) // b * b


def _vmem_budget_bytes():
    """Generation-aware usable-VMEM budget (v5e/v6e ~128 MiB phys, v7x 64 MiB)."""
    try:
        cap = getattr(pltpu.get_tpu_info(), "vmem_capacity_bytes", None)
        if cap:
            return int(cap * 0.80)          # leave headroom for code / Mosaic scratch
    except Exception:
        pass
    return 48 * 1024 * 1024                 # conservative fallback; safe on v7x's 64 MiB


def _lloyd_kernel(x_ref, cent_ref, sums_ref, counts_ref, clow_ref, c2_ref, *,
                  num_valid, num_clusters, num_clusters_padded, has_row_pad):
    """Grid = (num_iters, n_tiles). Streams/holds x tiles; centroids resident in the output block."""
    it = pl.program_id(0)
    t = pl.program_id(1)
    n_tiles = pl.num_programs(1)

    K = num_clusters
    Kp = num_clusters_padded
    x = x_ref[...]                                   # [TN, D] native dtype (bf16 or f32)
    TN = x.shape[0]

    @pl.when(jnp.logical_and(it == 0, t == 0))
    def _init_centroids():
        # Deterministic init: first K rows of the memory buffer (tile 0 always holds them,
        # since TN >= Kp >= K).  Padded clusters are initialized to zero and masked below.
        kk = lax.broadcasted_iota(jnp.int32, (Kp, 1), 0)
        cent_ref[...] = jnp.where(kk < K, x[:Kp].astype(jnp.float32), 0.0)

    @pl.when(t == 0)
    def _per_iteration_setup():
        # Reset accumulators and hoist iteration-invariant centroid work (cast + ||c||^2
        # + padded-cluster mask) out of the per-tile body.
        sums_ref[...] = jnp.zeros_like(sums_ref)
        counts_ref[...] = jnp.zeros_like(counts_ref)
        c = cent_ref[...]                            # [Kp, D] f32
        clow_ref[...] = c.astype(clow_ref.dtype)     # centroids in the matmul dtype
        c2 = jnp.sum(c * c, axis=-1, keepdims=True)  # [Kp, 1] f32
        if Kp > K:                                   # mask padded clusters out of the argmin
            kk = lax.broadcasted_iota(jnp.int32, (Kp, 1), 0)
            c2 = jnp.where(kk < K, c2, _PAD_DIST)
        c2_ref[...] = c2

    c_low = clow_ref[...]                            # [Kp, D] x.dtype (hoisted)
    c2 = c2_ref[...]                                 # [Kp, 1] f32     (hoisted)

    # Assignment, transposed orientation:
    #   argmin_k ||x - c_k||^2 == argmin_k (||c_k||^2 - 2 x.c_k)   (||x||^2 dropped).
    xc = lax.dot_general(c_low, x, (((1,), (1,)), ((), ())),
                         preferred_element_type=jnp.float32)          # [Kp, TN]  MXU
    d = c2 - 2.0 * xc                                                 # [Kp, TN]
    min_d = jnp.min(d, axis=0, keepdims=True)                         # [1, TN]
    row_k = lax.broadcasted_iota(jnp.int32, (Kp, TN), 0)
    labels = jnp.min(jnp.where(d <= min_d, row_k, Kp),
                     axis=0, keepdims=True)                           # [1, TN] first-index tie-break

    if has_row_pad:
        # Row padding only exists on the last tile; fold the mask into the cheap [1, TN]
        # label vector (padded rows get label Kp which never matches any real cluster).
        gid = t * TN + lax.broadcasted_iota(jnp.int32, (1, TN), 1)
        labels = jnp.where(gid < num_valid, labels, Kp)

    hit = row_k == labels                                             # [Kp, TN] transposed one-hot

    # sums[k, d] += sum_n onehot[k, n] * x[n, d]   ([Kp,TN] @ [TN,D] MXU matmul)
    sums_ref[...] += lax.dot_general(hit.astype(x.dtype), x, (((1,), (0,)), ((), ())),
                                     preferred_element_type=jnp.float32)
    # TODO(synk): f32 counts lose exact integers past ~2^24 rows per cluster.
    counts_ref[...] += jnp.sum(hit.astype(jnp.float32), axis=-1, keepdims=True)

    @pl.when(t == n_tiles - 1)
    def _update_centroids():
        cnt = counts_ref[...]
        # TODO(synk): sklearn reseeds empty clusters (k-means++); we keep the old centroid.
        cent_ref[...] = jnp.where(cnt > 0.0,
                                  sums_ref[...] / jnp.maximum(cnt, 1.0),
                                  cent_ref[...])


def _assign_kernel(x_ref, c_ref, labels_ref, *, num_clusters, num_clusters_padded):
    """Grid = (n_tiles,), fully parallel: final assignment against converged centroids."""
    K = num_clusters
    Kp = num_clusters_padded
    x = x_ref[...]                                   # [TN, D] native dtype
    TN = x.shape[0]
    c = c_ref[...]                                   # [Kp, D] f32, resident across the grid

    c2 = jnp.sum(c * c, axis=-1, keepdims=True)      # [Kp, 1]
    if Kp > K:
        kk = lax.broadcasted_iota(jnp.int32, (Kp, 1), 0)
        c2 = jnp.where(kk < K, c2, _PAD_DIST)
    xc = lax.dot_general(c.astype(x.dtype), x, (((1,), (1,)), ((), ())),
                         preferred_element_type=jnp.float32)          # [Kp, TN]
    d = c2 - 2.0 * xc
    min_d = jnp.min(d, axis=0, keepdims=True)
    row_k = lax.broadcasted_iota(jnp.int32, (Kp, TN), 0)
    labels_ref[...] = jnp.min(jnp.where(d <= min_d, row_k, Kp),
                              axis=0, keepdims=True)                  # [1, TN] int32, lane-dense


def kmeans_pallas(embeddings, number_cluster, num_iters=NUM_ITERS, max_tile_n=MAX_TILE_N):
    """Lloyd's k-means on [N, D] embeddings. Returns (labels [N] int32, centroids [K, D] f32)."""
    x = jnp.asarray(embeddings)                      # keep native dtype (bf16 stays bf16 for MXU)
    N, D = x.shape
    K = int(number_cluster)
    if N < K:
        raise ValueError(f"k-means needs at least K={K} samples, got N={N}")

    Kp = _round_up(max(K, 8), 8)                     # sublane-aligned cluster count
    itemsize = jnp.dtype(x.dtype).itemsize

    budget = _vmem_budget_bytes()
    usable = int(budget * 0.9)
    fixed_bytes = 2 * Kp * D * 4 + Kp * D * itemsize + 8 * Kp + (1 << 20)

    def _lloyd_vmem(tn):
        # double-buffered x block + cent/sums/c_low/c2 + [Kp,TN] intermediates + slack
        return 2 * tn * D * itemsize + 6 * Kp * tn * 4 + fixed_bytes

    tn_resident = _round_up(N, 8)
    if _lloyd_vmem(tn_resident) <= usable:
        # Resident regime: x block index stays (0,0) for every (it, t) step -> x is read
        # from HBM once for all Lloyd iterations.
        tn = tn_resident
    else:
        # Streaming regime: x re-read every iteration -> use the largest tiles the VMEM
        # budget allows (128-aligned) to amortize per-step overhead and DMA setup.
        tn = (usable - fixed_bytes) // (2 * D * itemsize + 6 * Kp * 4)
        tn = max(128, min(max_tile_n, (tn // 128) * 128))
        tn = max(tn, _round_up(Kp, 128))

    n_pad = _round_up(N, tn)
    n_tiles = n_pad // tn
    x_p = x if n_pad == N else jnp.zeros((n_pad, D), x.dtype).at[:N].set(x)

    lloyd_cost = pl.CostEstimate(
        flops=4 * num_iters * n_pad * Kp * D,
        transcendentals=0,
        bytes_accessed=(num_iters if n_tiles > 1 else 1) * n_pad * D * itemsize + Kp * D * 4,
    )
    assign_cost = pl.CostEstimate(
        flops=2 * n_pad * Kp * D,
        transcendentals=0,
        bytes_accessed=n_pad * D * itemsize + Kp * D * 4 + n_pad * 4,
    )

    # Kernel A: Lloyd iterations (outer axis) over row tiles (inner axis).
    centroids_p = pl.pallas_call(
        functools.partial(_lloyd_kernel, num_valid=N, num_clusters=K,
                          num_clusters_padded=Kp, has_row_pad=(n_pad != N)),
        out_shape=jax.ShapeDtypeStruct((Kp, D), jnp.float32),
        grid=(num_iters, n_tiles),
        in_specs=[pl.BlockSpec((tn, D), lambda it, t: (t, 0))],
        out_specs=pl.BlockSpec((Kp, D), lambda it, t: (0, 0)),       # resident accumulator
        scratch_shapes=[pltpu.VMEM((Kp, D), jnp.float32),            # per-iteration sums
                        pltpu.VMEM((Kp, 1), jnp.float32),            # per-iteration counts
                        pltpu.VMEM((Kp, D), x.dtype),                # hoisted matmul-dtype centroids
                        pltpu.VMEM((Kp, 1), jnp.float32)],           # hoisted ||c||^2 (+pad mask)
        compiler_params=pltpu.CompilerParams(
            dimension_semantics=("arbitrary", "arbitrary"),
            vmem_limit_bytes=budget),
        cost_estimate=lloyd_cost,
    )(x_p)

    # Kernel B: final assignment; embarrassingly parallel over row tiles.
    labels2d = pl.pallas_call(
        functools.partial(_assign_kernel, num_clusters=K, num_clusters_padded=Kp),
        out_shape=jax.ShapeDtypeStruct((1, n_pad), jnp.int32),
        grid=(n_tiles,),
        in_specs=[pl.BlockSpec((tn, D), lambda t: (t, 0)),
                  pl.BlockSpec((Kp, D), lambda t: (0, 0))],
        out_specs=pl.BlockSpec((1, tn), lambda t: (0, t)),
        compiler_params=pltpu.CompilerParams(
            dimension_semantics=("parallel",),
            vmem_limit_bytes=budget),
        cost_estimate=assign_cost,
    )(x_p, centroids_p)

    return labels2d[0, :N], centroids_p[:K]


class KmeansPallas:
    """Mirrors architecture/loss/kmeans.py::Kmeans forward semantics."""

    def __init__(self, number_cluster: int, memory_size: int = 0, logger=None):
        self.number_cluster = number_cluster
        self.max_memory_size = memory_size
        self.logger = logger
        self.memory = None
        # TODO(synk): silhouette_score member has no Pallas equivalent and is unused in forward.

    def forward(self, embeddings):
        embeddings = jnp.asarray(embeddings)
        if self.memory is None:
            self.memory = embeddings
        else:
            self.memory = jnp.concatenate((self.memory, embeddings), axis=0)
            max_data_size = self.max_memory_size + embeddings.shape[0]
            if self.memory.shape[0] > max_data_size:
                self.memory = self.memory[-max_data_size:]
        all_embeddings = self.memory
        cluster_labels_all, centroids = kmeans_pallas(all_embeddings, self.number_cluster)
        new_labels = cluster_labels_all[-embeddings.shape[0]:]
        return {"cluster_labels": new_labels, "centroids": centroids}


def _kmeans_ref(x, K, num_iters=NUM_ITERS):
    """Pure-JAX full-f32 Lloyd reference with identical init / empty-cluster rule."""
    x = x.astype(jnp.float32)
    c = x[:K]

    def assign(c):
        d = jnp.sum((x[:, None, :] - c[None, :, :]) ** 2, axis=-1)
        return jnp.argmin(d, axis=-1)

    for _ in range(num_iters):
        lab = assign(c)
        sums = jax.ops.segment_sum(x, lab, num_segments=K)
        counts = jax.ops.segment_sum(jnp.ones((x.shape[0],), jnp.float32), lab,
                                     num_segments=K)[:, None]
        c = jnp.where(counts > 0, sums / jnp.maximum(counts, 1.0), c)
    return assign(c), c


def _make_clustered(key, n, k, d, spread=5.0, noise=0.1):
    kc, ka, kn = jax.random.split(key, 3)
    centers = jax.random.normal(kc, (k, d), dtype=jnp.float32) * spread
    assign = jax.random.randint(ka, (n,), 0, k)
    return centers[assign] + noise * jax.random.normal(kn, (n, d), dtype=jnp.float32)


if __name__ == "__main__":
    key = jax.random.PRNGKey(0)
    k1, k2, k3 = jax.random.split(key, 3)

    # --- test 1: module forward (memory concat path), N=64, D=32, K=8 ---
    N, D, K = 64, 32, 8
    emb_a = _make_clustered(k1, N, K, D)
    emb_b = _make_clustered(k2, 32, K, D)

    module = KmeansPallas(number_cluster=K, memory_size=64)
    out = module.forward(emb_a)
    labels = jax.block_until_ready(out["cluster_labels"])
    centroids = jax.block_until_ready(out["centroids"])
    assert labels.shape == (N,) and centroids.shape == (K, D)
    assert int(jnp.min(labels)) >= 0 and int(jnp.max(labels)) < K

    out2 = module.forward(emb_b)             # memory grows to 96 rows, labels for last 32
    labels2 = jax.block_until_ready(out2["cluster_labels"])
    assert labels2.shape == (32,)
    assert int(jnp.min(labels2)) >= 0 and int(jnp.max(labels2)) < K

    # --- test 2: direct call vs pure-JAX reference (same init / update rules) ---
    ref_labels, ref_centroids = _kmeans_ref(emb_a, K)
    p_labels, p_centroids = kmeans_pallas(emb_a, K)
    p_labels = jax.block_until_ready(p_labels)
    agreement = float(jnp.mean((p_labels == ref_labels).astype(jnp.float32)))
    max_cdiff = float(jnp.max(jnp.abs(p_centroids - ref_centroids)))
    assert agreement >= 0.9, f"label agreement with reference too low: {agreement}"
    assert max_cdiff < 1.0, f"centroid mismatch vs reference: {max_cdiff}"

    # --- test 3: non-aligned K (cluster padding) and non-aligned N (row padding) ---
    N3, K3 = 203, 10
    emb_c = _make_clustered(k3, N3, K3, D)
    ref_l3, ref_c3 = _kmeans_ref(emb_c, K3)
    p_l3, p_c3 = kmeans_pallas(emb_c, K3)
    p_l3 = jax.block_until_ready(p_l3)
    assert p_l3.shape == (N3,) and p_c3.shape == (K3, D)
    assert int(jnp.min(p_l3)) >= 0 and int(jnp.max(p_l3)) < K3
    agreement3 = float(jnp.mean((p_l3 == ref_l3).astype(jnp.float32)))
    max_cdiff3 = float(jnp.max(jnp.abs(p_c3 - ref_c3)))
    assert agreement3 >= 0.9, f"label agreement (padded case) too low: {agreement3}"
    assert max_cdiff3 < 1.0, f"centroid mismatch (padded case): {max_cdiff3}"

    print("KERNEL_OK")
</pallas_src>

<mosaic_0001>
module attributes {stable_mosaic.version = 11 : i64} {
  func.func @_lloyd_kernel(%arg0: i32, %arg1: i32, %arg2: memref<64x32xf32, #tpu.memory_space<vmem>>, %arg3: memref<8x32xf32, #tpu.memory_space<vmem>>, %arg4: memref<8x32xf32, #tpu.memory_space<vmem>>, %arg5: memref<8x1xf32, #tpu.memory_space<vmem>>, %arg6: memref<8x32xf32, #tpu.memory_space<vmem>>, %arg7: memref<8x1xf32, #tpu.memory_space<vmem>>) attributes {dimension_semantics = [#tpu.dimension_semantics<arbitrary>, #tpu.dimension_semantics<arbitrary>], iteration_bounds = array<i64: 16, 1>, scalar_prefetch = 0 : i64, scratch_operands = 4 : i64, tpu.core_type = #tpu.core_type<tc>, window_params = [{transform_indices = @transform_0, window_bounds = array<i64: 64, 32>}, {pipeline_mode = #tpu.pipeline_mode<synchronous>, transform_indices = @transform_1, window_bounds = array<i64: 8, 32>}]} {
    %c0 = arith.constant 0 : index
    %c0_0 = arith.constant 0 : index
    %0 = vector.load %arg2[%c0, %c0_0] : memref<64x32xf32, #tpu.memory_space<vmem>>, vector<64x32xf32>
    %c0_i32 = arith.constant 0 : i32
    %1 = arith.cmpi eq, %arg0, %c0_i32 : i32
    %c0_i32_1 = arith.constant 0 : i32
    %2 = arith.cmpi eq, %arg1, %c0_i32_1 : i32
    %3 = arith.andi %1, %2 : i1
    %4 = arith.extui %3 : i1 to i32
    %c0_i32_2 = arith.constant 0 : i32
    %5 = arith.cmpi ne, %4, %c0_i32_2 : i32
    scf.if %5 {
      %43 = tpu.iota {dimensions = array<i32: 0>} : vector<8x1xi32>
      %c8_i32_24 = arith.constant 8 : i32
      %44 = vector.broadcast %c8_i32_24 : i32 to vector<8x1xi32>
      %45 = arith.cmpi slt, %43, %44 : vector<8x1xi32>
      %46 = vector.extract_strided_slice %0 {offsets = [0, 0], sizes = [8, 32], strides = [1, 1]} : vector<64x32xf32> to vector<8x32xf32>
      %cst_25 = arith.constant 0.000000e+00 : f32
      %47 = vector.shape_cast %45 : vector<8x1xi1> to vector<8x1xi1>
      %48 = vector.broadcast %47 : vector<8x1xi1> to vector<8x32xi1>
      %49 = vector.broadcast %cst_25 : f32 to vector<8x32xf32>
      %50 = arith.select %48, %46, %49 : vector<8x32xi1>, vector<8x32xf32>
      %c0_26 = arith.constant 0 : index
      %c0_27 = arith.constant 0 : index
      %51 = vector.load %arg3[%c0_26, %c0_27] : memref<8x32xf32, #tpu.memory_space<vmem>>, vector<8x32xf32>
      tpu.vector_store %arg3[%c0_26, %c0_27], %50 {strides = array<i32>} : memref<8x32xf32, #tpu.memory_space<vmem>>, vector<8x32xf32>,
    } else {
    }
    %c0_i32_3 = arith.constant 0 : i32
    %6 = arith.cmpi eq, %arg1, %c0_i32_3 : i32
    %7 = arith.extui %6 : i1 to i32
    %c0_i32_4 = arith.constant 0 : i32
    %8 = arith.cmpi ne, %7, %c0_i32_4 : i32
    scf.if %8 {
      %cst_24 = arith.constant 0.000000e+00 : f32
      %43 = vector.broadcast %cst_24 : f32 to vector<8x32xf32>
      %c0_25 = arith.constant 0 : index
      %c0_26 = arith.constant 0 : index
      %44 = vector.load %arg4[%c0_25, %c0_26] : memref<8x32xf32, #tpu.memory_space<vmem>>, vector<8x32xf32>
      tpu.vector_store %arg4[%c0_25, %c0_26], %43 {strides = array<i32>} : memref<8x32xf32, #tpu.memory_space<vmem>>, vector<8x32xf32>,
      %cst_27 = arith.constant 0.000000e+00 : f32
      %45 = vector.broadcast %cst_27 : f32 to vector<8x1xf32>
      %c0_28 = arith.constant 0 : index
      %c0_29 = arith.constant 0 : index
      %46 = vector.load %arg5[%c0_28, %c0_29] : memref<8x1xf32, #tpu.memory_space<vmem>>, vector<8x1xf32>
      tpu.vector_store %arg5[%c0_28, %c0_29], %45 {strides = array<i32>} : memref<8x1xf32, #tpu.memory_space<vmem>>, vector<8x1xf32>,
      %c0_30 = arith.constant 0 : index
      %c0_31 = arith.constant 0 : index
      %47 = vector.load %arg3[%c0_30, %c0_31] : memref<8x32xf32, #tpu.memory_space<vmem>>, vector<8x32xf32>
      %c0_32 = arith.constant 0 : index
      %c0_33 = arith.constant 0 : index
      %48 = vector.load %arg6[%c0_32, %c0_33] : memref<8x32xf32, #tpu.memory_space<vmem>>, vector<8x32xf32>
      tpu.vector_store %arg6[%c0_32, %c0_33], %47 {strides = array<i32>} : memref<8x32xf32, #tpu.memory_space<vmem>>, vector<8x32xf32>,
      %49 = arith.mulf %47, %47 : vector<8x32xf32>
      %cst_34 = arith.constant dense<0.000000e+00> : vector<8xf32>
      %50 = vector.multi_reduction <add>, %49, %cst_34 [1] : vector<8x32xf32> to vector<8xf32>
      %51 = vector.shape_cast %50 : vector<8xf32> to vector<8x1xf32>
      %c0_35 = arith.constant 0 : index
      %c0_36 = arith.constant 0 : index
      %52 = vector.load %arg7[%c0_35, %c0_36] : memref<8x1xf32, #tpu.memory_space<vmem>>, vector<8x1xf32>
      tpu.vector_store %arg7[%c0_35, %c0_36], %51 {strides = array<i32>} : memref<8x1xf32, #tpu.memory_space<vmem>>, vector<8x1xf32>,
    } else {
    }
    %c0_5 = arith.constant 0 : index
    %c0_6 = arith.constant 0 : index
    %9 = vector.load %arg6[%c0_5, %c0_6] : memref<8x32xf32, #tpu.memory_space<vmem>>, vector<8x32xf32>
    %c0_7 = arith.constant 0 : index
    %c0_8 = arith.constant 0 : index
    %10 = vector.load %arg7[%c0_7, %c0_8] : memref<8x1xf32, #tpu.memory_space<vmem>>, vector<8x1xf32>
    %cst = arith.constant dense<0.000000e+00> : vector<8x64xf32>
    %11 = tpu.matmul %9, %0, %cst {dimension_numbers = #tpu.dot_dimension_numbers<[1], [1], [0], [0], [0, 0, 1, 0], [], []>} : vector<8x32xf32>, vector<64x32xf32>, vector<8x64xf32> -> vector<8x64xf32>
    %cst_9 = arith.constant 2.000000e+00 : f32
    %12 = vector.broadcast %cst_9 : f32 to vector<8x64xf32>
    %13 = arith.mulf %12, %11 : vector<8x64xf32>
    %14 = vector.broadcast %10 : vector<8x1xf32> to vector<8x64xf32>
    %15 = arith.subf %14, %13 : vector<8x64xf32>
    %cst_10 = arith.constant dense<0x7F800000> : vector<64xf32>
    %16 = vector.multi_reduction <minimumf>, %15, %cst_10 [0] : vector<8x64xf32> to vector<64xf32>
    %17 = vector.shape_cast %16 : vector<64xf32> to vector<1x64xf32>
    %18 = tpu.iota {dimensions = array<i32: 0>} : vector<8x64xi32>
    %19 = vector.broadcast %17 : vector<1x64xf32> to vector<8x64xf32>
    %20 = arith.cmpf ole, %15, %19 : vector<8x64xf32>
    %c8_i32 = arith.constant 8 : i32
    %21 = vector.broadcast %c8_i32 : i32 to vector<8x64xi32>
    %22 = arith.select %20, %18, %21 : vector<8x64xi1>, vector<8x64xi32>
    %cst_11 = arith.constant dense<2147483647> : vector<64xi32>
    %23 = vector.multi_reduction <minsi>, %22, %cst_11 [0] : vector<8x64xi32> to vector<64xi32>
    %24 = vector.shape_cast %23 : vector<64xi32> to vector<1x64xi32>
    %25 = vector.broadcast %24 : vector<1x64xi32> to vector<8x64xi32>
    %26 = arith.cmpi eq, %18, %25 : vector<8x64xi32>
    %c0_12 = arith.constant 0 : index
    %c0_13 = arith.constant 0 : index
    %27 = vector.load %arg4[%c0_12, %c0_13] : memref<8x32xf32, #tpu.memory_space<vmem>>, vector<8x32xf32>
    %28 = arith.extui %26 : vector<8x64xi1> to vector<8x64xi32>
    %29 = arith.sitofp %28 : vector<8x64xi32> to vector<8x64xf32>
    %cst_14 = arith.constant dense<0.000000e+00> : vector<8x32xf32>
    %30 = tpu.matmul %29, %0, %cst_14 {dimension_numbers = #tpu.dot_dimension_numbers<[1], [0], [0], [1], [0, 0, 1, 1], [], []>} : vector<8x64xf32>, vector<64x32xf32>, vector<8x32xf32> -> vector<8x32xf32>
    %31 = arith.addf %27, %30 : vector<8x32xf32>
    %c0_15 = arith.constant 0 : index
    %c0_16 = arith.constant 0 : index
    %32 = vector.load %arg4[%c0_15, %c0_16] : memref<8x32xf32, #tpu.memory_space<vmem>>, vector<8x32xf32>
    tpu.vector_store %arg4[%c0_15, %c0_16], %31 {strides = array<i32>} : memref<8x32xf32, #tpu.memory_space<vmem>>, vector<8x32xf32>,
    %c0_17 = arith.constant 0 : index
    %c0_18 = arith.constant 0 : index
    %33 = vector.load %arg5[%c0_17, %c0_18] : memref<8x1xf32, #tpu.memory_space<vmem>>, vector<8x1xf32>
    %34 = arith.extui %26 : vector<8x64xi1> to vector<8x64xi32>
    %35 = arith.sitofp %34 : vector<8x64xi32> to vector<8x64xf32>
    %cst_19 = arith.constant dense<0.000000e+00> : vector<8xf32>
    %36 = vector.multi_reduction <add>, %35, %cst_19 [1] : vector<8x64xf32> to vector<8xf32>
    %37 = vector.shape_cast %36 : vector<8xf32> to vector<8x1xf32>
    %38 = arith.addf %33, %37 : vector<8x1xf32>
    %c0_20 = arith.constant 0 : index
    %c0_21 = arith.constant 0 : index
    %39 = vector.load %arg5[%c0_20, %c0_21] : memref<8x1xf32, #tpu.memory_space<vmem>>, vector<8x1xf32>
    tpu.vector_store %arg5[%c0_20, %c0_21], %38 {strides = array<i32>} : memref<8x1xf32, #tpu.memory_space<vmem>>, vector<8x1xf32>,
    %c0_i32_22 = arith.constant 0 : i32
    %40 = arith.cmpi eq, %arg1, %c0_i32_22 : i32
    %41 = arith.extui %40 : i1 to i32
    %c0_i32_23 = arith.constant 0 : i32
    %42 = arith.cmpi ne, %41, %c0_i32_23 : i32
    scf.if %42 {
      %c0_24 = arith.constant 0 : index
      %c0_25 = arith.constant 0 : index
      %43 = vector.load %arg5[%c0_24, %c0_25] : memref<8x1xf32, #tpu.memory_space<vmem>>, vector<8x1xf32>
      %cst_26 = arith.constant 0.000000e+00 : f32
      %44 = vector.broadcast %cst_26 : f32 to vector<8x1xf32>
      %45 = arith.cmpf ogt, %43, %44 : vector<8x1xf32>
      %c0_27 = arith.constant 0 : index
      %c0_28 = arith.constant 0 : index
      %46 = vector.load %arg4[%c0_27, %c0_28] : memref<8x32xf32, #tpu.memory_space<vmem>>, vector<8x32xf32>
      %cst_29 = arith.constant 1.000000e+00 : f32
      %47 = vector.broadcast %cst_29 : f32 to vector<8x1xf32>
      %48 = arith.maximumf %43, %47 : vector<8x1xf32>
      %49 = vector.broadcast %48 : vector<8x1xf32> to vector<8x32xf32>
      %50 = arith.divf %46, %49 : vector<8x32xf32>
      %c0_30 = arith.constant 0 : index
      %c0_31 = arith.constant 0 : index
      %51 = vector.load %arg3[%c0_30, %c0_31] : memref<8x32xf32, #tpu.memory_space<vmem>>, vector<8x32xf32>
      %52 = vector.shape_cast %45 : vector<8x1xi1> to vector<8x1xi1>
      %53 = vector.broadcast %52 : vector<8x1xi1> to vector<8x32xi1>
      %54 = arith.select %53, %50, %51 : vector<8x32xi1>, vector<8x32xf32>
      %c0_32 = arith.constant 0 : index
      %c0_33 = arith.constant 0 : index
      %55 = vector.load %arg3[%c0_32, %c0_33] : memref<8x32xf32, #tpu.memory_space<vmem>>, vector<8x32xf32>
      tpu.vector_store %arg3[%c0_32, %c0_33], %54 {strides = array<i32>} : memref<8x32xf32, #tpu.memory_space<vmem>>, vector<8x32xf32>,
    } else {
    }
    return
  }
  func.func @transform_0(%arg0: i32, %arg1: i32) -> (i32, i32) {
    %c0_i32 = arith.constant 0 : i32
    %c0_i32_0 = arith.constant 0 : i32
    return %arg1, %c0_i32 : i32, i32
  }
  func.func @transform_1(%arg0: i32, %arg1: i32) -> (i32, i32) {
    %c0_i32 = arith.constant 0 : i32
    %c0_i32_0 = arith.constant 0 : i32
    %c0_i32_1 = arith.constant 0 : i32
    return %c0_i32, %c0_i32_0 : i32, i32
  }
}

</mosaic_0001>

<bundles_post_ra>
// kernel: tpu_custom_call.1
= control target key start
LH: loop header
LB: loop body
LE: loop exit
PB: predicated region body
PF: predicated region fallthrough
CT: control target
= control target key end

     0   :  { %6 = vsyncpa [#allocation7], 0  ;;  %s491_s6 = smov 0   ;;  %s493_s7 = smov 0   ;;  %s575_s0 = inlined_call_operand.vmem [shape: f32[64,32], index: 0, kind: input, shape index: {}]   ;;  %s576_s1 = inlined_call_operand.hbm [shape: f32[8,32], index: 1, kind: output, shape index: {}]  }
   0x1   :  { %s495_s8 = smov 0  }
   0x2 LB: > { %s363_s9 = sadd.s32 4294967295, %s476_s8   ;;  %s24_s10 = sadd.s32 1, %s472_s7  ;;  %s476_s8 = sphi %s495_s8, %s12_s8   ;;  %s472_s7 = sphi %s493_s7, %s578_s7   ;;  %s468_s6 = sphi %s491_s6, %s577_s6  }
   0x3   : > { %p26_p0 = scmp.ge.s32.totalorder %s24_s10, 16  ;;  %p366_p1 = scmp.ge.s32.totalorder %s476_s8, 1 }
   0x4   : > { %p96_p2 = scmp.lt.s32.totalorder %s476_s8, 17 }
   0x5   : > { %s580_s10 = smov (%p26_p0, %s24_s10), 0 }
   0x6   : > { %p97_p3 = pnand %p366_p1, %p96_p2 }
   0x7   : > { %p125_p4 = scmp.eq.s32.totalorder (!%p97_p3), %s468_s6, 0 }
   0x8   : > { %100 = sbr.rel (%p97_p3) target bundleno = 564 (0x234), region = 24 }
   0xd   : > { %v117_v0 = vld [vmem:[%s575_s0] sm:$0xff]  ;;  %v118_v1 = vld [vmem:[%s575_s0 + $0x8] sm:$0xff]  ;;  %v119_v2 = vld [vmem:[%s575_s0 + $0x10] sm:$0xff]  ;;  %130 = sbr.rel (!%p125_p4) target bundleno = 18 (0x12), region = 28  ;;  %vm137_vm0 = vcmask (%p125_p4), 261120  }
   0xe   : > { %v120_v3 = vld [vmem:[%s575_s0 + $0x18] sm:$0xff]  ;;  %v121_v4 = vld [vmem:[%s575_s0 + $0x20] sm:$0xff]  ;;  %v122_v5 = vld [vmem:[%s575_s0 + $0x28] sm:$0xff]  ;;  %138 = vst.msk [vmem:[#allocation6] sm:$0xff] (%p125_p4), %vm137_vm0, %v117_v0 }
   0xf   : > { %v123_v6 = vld [vmem:[%s575_s0 + $0x30] sm:$0xff]  ;;  %v124_v7 = vld [vmem:[%s575_s0 + $0x38] sm:$0xff] }
  0x12 PF: > { %vm142_vm1 = vcmask 261120   ;;  %247 = vmatpush.msra.mxu1 %v124_v7  ;;  %v478_v12 = vmov 0   ;;  %vm144_vm2 = vcmask 7168   ;;  %v479_v15 = vmov 0.0   ;;  %s480_s27 = smov [#allocation6]   ;;  %s311_s2 = sshll.u32 %s576_s1, 4  ;;  %s312_s2 = int_to_ptr.hbm [resolvable:$true] %s311_s2 }
  0x13   : > { %368 = vmatpush.xpose.msk.msra.mxu0 %vm142_vm1, %v124_v7  ;;  %417 = vset.pattern.permute.xlu0 %v478_v12  ;;  %143 = vst.msk [vmem:[#allocation2] sm:$0xff] %vm142_vm1, %v479_v15  ;;  %vm210_vm3 = vcmask 523264   ;;  %v218_v24 = vlaneseq  ;;  %s309_s28 = sshll.u32 %s480_s27, 4  ;;  %p388_p5 = scmp.eq.s32.totalorder %s363_s9, 15  ;;  %s310_s28 = int_to_ptr.vmem [resolvable:$true] %s309_s28 }
  0x14   : > { %248 = vmatpush.msra.mxu1 %v123_v6  ;;  %419 = vset.pattern.permute.xlu2 %v478_v12  ;;  %145 = vst.msk [vmem:[#allocation3] sm:$0xff] %vm144_vm2, %v479_v15 }
  0x15   : > { %v534_v8 = vld [vmem:[#allocation6] sm:$0xff]  ;;  %418 = vset.pattern.permute.xlu1 %v478_v12  ;;  %v219_v27 = vshrl.u32 %v218_v24, 7 }
  0x16   : > { %v148_v9 = vmul.f32 %v534_v8, %v534_v8  ;;  %147 = vst.msk [vmem:[#allocation4] sm:$0xff] %vm142_vm1, %v534_v8  ;;  %249 = vmatpush.msra.mxu1 %v122_v5 }
  0x17   : > { %369 = vmatpush.xpose.msk.msra.mxu0 %vm142_vm1, %v123_v6 }
  0x18   : > { %v149_v10 = vsel %vm142_vm1, %v148_v9, 0.0  ;;  %250 = vmatpush.msra.mxu1 %v121_v4 }
  0x19   : > { %150 = vadd.xlane.f32.xlu0 %v149_v10 }
  0x1a   : > { %251 = vmatpush.msra.mxu1 %v120_v3  ;;  %v233_v42 = vld [vmem:[#allocation2] sm:$0xff] }
  0x1b   : > { %370 = vmatpush.xpose.msk.msra.mxu0 %vm142_vm1, %v122_v5  ;;  %v261_v39 = vld [vmem:[#allocation3] sm:$0xff] }
  0x1c   : > { %252 = vmatpush.msra.mxu1 %v119_v2 }
  0x1d   : > { %v153_v11 = vld [vmem:[#allocation4] sm:$0xff] }
  0x1e   : > { %253 = vmatpush.msra.mxu1 %v118_v1 }
  0x1f   : > { %371 = vmatpush.xpose.msk.msra.mxu0 %vm142_vm1, %v121_v4 }
  0x20   : > { %254 = vmatpush.msra.mxu1 %v117_v0 }
  0x23   : > { %372 = vmatpush.xpose.msk.msra.mxu0 %vm142_vm1, %v120_v3 }
  0x27   : > { %373 = vmatpush.xpose.msk.msra.mxu0 %vm142_vm1, %v119_v2 }
  0x2b   : > { %374 = vmatpush.xpose.msk.msra.mxu0 %vm142_vm1, %v118_v1 }
  0x2f   : > { %375 = vmatpush.xpose.msk.msra.mxu0 %vm142_vm1, %v117_v0 }
  0x32   : > { %376 = vmatmul.msk.f32.vlgmr.msra.gmra.mxu0 %vm142_vm1, %v153_v11 }
  0x8c   : > { %v151_v13 = vpop.xlane.xlu0 %150 }
  0x8d   : > { %152 = vst.msk [vmem:[#allocation5] sm:$0xff] %vm144_vm2, %v151_v13 }
  0x94   : > { %v154_v14 = vld [vmem:[#allocation5] sm:$0xff] }
  0x95   : > { %206 = vperm.xlu0 %417, %v154_v14  }
  0xaf   : > { %v200_v16 = vpop.f32.mrf.mxu0 }
  0xb0   : > { %v203_v17 = vmul.f32 2.0, %v200_v16 }
 0x107   : > { %v207_v18 = vpop.permute.xlu0 %206 }
 0x108   : > { %v209_v19 = vsub.f32 %v207_v18, %v203_v17 }
 0x10a   : > { %v211_v20 = vsel %vm210_vm3, %v209_v19, inf }
 0x10b   : > { %v212_v21 = vrot.slane %v211_v20, 4 }
 0x10d   : > { %v213_v22 = vmin.f32 %v211_v20, %v212_v21 }
 0x10f   : > { %v214_v23 = vrot.slane %v213_v22, 2 }
 0x111   : > { %v215_v25 = vmin.f32 %v213_v22, %v214_v23 }
 0x113   : > { %v216_v26 = vrot.slane %v215_v25, 1 }
 0x115   : > { %v217_v28 = vmin.f32 %v215_v25, %v216_v26 }
 0x117   : > { %vm220_vm4 = vcmp.le.f32.partialorder %v209_v19, %v217_v28 }
 0x118   : > { %v221_v29 = vsel %vm220_vm4, %v219_v27, 8 }
 0x119   : > { %v222_v30 = vsel %vm210_vm3, %v221_v29, 2147483647 }
 0x11a   : > { %v223_v31 = vrot.slane %v222_v30, 4 }
 0x11c   : > { %vm224_vm5 = vcmp.lt.s32.totalorder %v222_v30, %v223_v31 }
 0x11d   : > { %v225_v32 = vsel %vm224_vm5, %v222_v30, %v223_v31 }
 0x11e   : > { %v226_v33 = vrot.slane %v225_v32, 2 }
 0x120   : > { %vm227_vm6 = vcmp.lt.s32.totalorder %v225_v32, %v226_v33 }
 0x121   : > { %v228_v34 = vsel %vm227_vm6, %v225_v32, %v226_v33 }
 0x122   : > { %v229_v35 = vrot.slane %v228_v34, 1 }
 0x124   : > { %vm230_vm7 = vcmp.lt.s32.totalorder %v228_v34, %v229_v35 }
 0x125   : > { %v231_v36 = vsel %vm230_vm7, %v228_v34, %v229_v35 }
 0x126   : > { %vm232_vm8 = vcmp.eq.s32.totalorder %v219_v27, %v231_v36 }
 0x127   : > { %v377_v37 = vsel %vm232_vm8, 1.0, %v479_v15 }
 0x128   : > { %378 = vmatmul.msk.f32.vlgmr.msra.gmra.mxu1 %vm210_vm3, %v377_v37  ;;  %v262_v38 = vsel %vm210_vm3, %v377_v37, 0.0 }
 0x129   : > { %263 = vadd.xlane.f32.xlu1 %v262_v38 }
 0x19c   : > { %v264_v40 = vpop.xlane.xlu1 %263 }
 0x19d   : > { %v265_v41 = vadd.f32 %v264_v40, %v261_v39 }
 0x19f   : > { %267 = vst.msk [vmem:[#allocation3] sm:$0xff] %vm144_vm2, %v265_v41 }
 0x1a5   : > { %v256_v43 = vpop.f32.mrf.mxu1 }
 0x1a6   : > { %v259_v44 = vadd.f32 %v256_v43, %v233_v42  ;;  %v271_v45 = vld [vmem:[#allocation3] sm:$0xff] }
 0x1a7   : > { %v274_v46 = vmax.f32 %v271_v45, 1.0  ;;  %vm272_vm9 = vcmp.gt.f32.partialorder %v271_v45, 0.0 }
 0x1a8   : > { %260 = vst.msk [vmem:[#allocation2] sm:$0xff] %vm142_vm1, %v259_v44  ;;  %v296_v47 = vsel %vm272_vm9, 1, %v478_v12 }
 0x1a9   : > { %277 = vperm.xlu1 %418, %v274_v46   ;;  %298 = vperm.xlu2 %419, %v296_v47  }
 0x1af   : > { %v273_v59 = vld [vmem:[#allocation2] sm:$0xff] }
 0x203   : > { %v299_v57 = vpop.permute.xlu2 %298 }
 0x204   : > { %vm300_vm14 = vcmp.eq.s32.totalorder %v299_v57, 1 }
 0x21b   : > { %v278_v48 = vpop.permute.xlu1 %277 }
 0x21c   : > { %420 = vrcp.f32 %v278_v48  ;;  %v291_v52 = vand.u32 2147483648, %v278_v48  ;;  %v289_v54 = vand.u32 2147483647, %v278_v48  ;;  %vm285_vm11 = vweird.f32 %v278_v48 }
 0x21e   : > { %v292_v56 = vor.u32 1.1754944e-38, %v291_v52  ;;  %vm290_vm13 = vcmp.eq.f32.partialorder %v289_v54, 8.507059e+37 }
 0x222   : > { %v421_v49 = vpop.eup %420 }
 0x223   : > { %v281_v50 = vmul.f32 %v421_v49, %v278_v48  ;;  %vm286_vm10 = vweird.f32 %v421_v49 }
 0x224   : > { %vm287_vm12 = vmor %vm285_vm11, %vm286_vm10 }
 0x225   : > { %v282_v51 = vsub.f32 1.0, %v281_v50 }
 0x227   : > { %v283_v53 = vmul.f32 %v421_v49, %v282_v51 }
 0x229   : > { %v284_v55 = vadd.f32 %v421_v49, %v283_v53 }
 0x22b   : > { %v288_v58 = vsel %vm287_vm12, %v421_v49, %v284_v55 }
 0x22c   : > { %v293_v60 = vsel %vm290_vm13, %v292_v56, %v288_v58 }
 0x22d   : > { %v294_v61 = vmul.f32 %v293_v60, %v273_v59 }
 0x22f   : > { %v301_v62 = vsel %vm300_vm14, %v294_v61, %v534_v8 }
 0x230   : > { %302 = vst.msk [vmem:[#allocation6] sm:$0xff] %vm142_vm1, %v301_v62 }
 0x231   : > { %385 = dma.vmem_to_hbm [thread:$0]  (%p388_p5), %s310_s28, 128, %s312_s2, [#allocation7]  }
 0x232   : > { %463 = dma.done.wait (%p388_p5), [#allocation7], 128  }
 0x233   : > { %465 = vsyncadd (%p388_p5), [#allocation7], 4294967168 }
 0x234 PF: > { %s12_s8 = sadd.s32 1, %s476_s8   ;;  %s577_s6 = smov %s472_s7 }
 0x235   : > { %p9_p6 = scmp.ge.s32.totalorder %s12_s8, 18   ;;  %s578_s7 = smov %s580_s10 }
 0x237   :  { %11 = sbr.rel (!%p9_p6) target bundleno = 2 (0x2), region = 63 }
 0x23c   :  { %325 = vsyncpa [#allocation7], 1 }
 0x23d   :  { %327 = vsyncpa [#allocation7 + $0x1], 1 }

</bundles_post_ra>
